<compile_context>
chip_gen: v5e
topology: v5e:2x2
jax: 0.10.0
libtpu: 0.0.40
codegen_flags: <defaults>
</compile_context>

<pallas_src>
import functools
import math

import jax
import jax.numpy as jnp
from jax.experimental import pallas as pl
from jax.experimental.pallas import tpu as pltpu


COEF = 0.35          # std-dev of the multiplicative Gaussian noise (module default)
_LANES = 512         # lane-dense slab width (multiple of 128)
_TILE_ROWS = 1024    # max rows per grid step -> (1024, 512) f32 tile = 2 MiB / buffer


def _cdiv(a, b):
    return -(-a // b)


def _round_up(x, m):
    return _cdiv(x, m) * m


def _speckle_kernel(seed_ref, x_ref, o_ref, *, coef, sub_rows):
    """out = x * (1 + coef * z), z ~ approx N(0,1) via sum-of-4-bytes CLT."""
    tm, lanes = x_ref.shape
    n_sub = tm // sub_rows

    # Linear map turning the hash byte-sum (mean 510, var 4*(256^2-1)/12) directly
    # into the multiplicative factor 1 + coef * z.
    std = math.sqrt(4.0 * (256.0 ** 2 - 1.0) / 12.0)
    a = jnp.float32(coef / std)
    b = jnp.float32(1.0 - coef * 510.0 / std)

    mask_b = jnp.uint32(0x00FF00FF)
    mask_lo = jnp.uint32(0x0000FFFF)

    # Flat in-sub-block element index, computed once and reused every iteration.
    row_i = jax.lax.broadcasted_iota(jnp.int32, (sub_rows, lanes), 0)
    col_i = jax.lax.broadcasted_iota(jnp.int32, (sub_rows, lanes), 1)
    flat = (row_i * lanes + col_i).astype(jnp.uint32)

    seed_u = (seed_ref[0].astype(jnp.uint32) * jnp.uint32(0x9E3779B9)
              + jnp.uint32(0x85EBCA6B))
    tile_base = (pl.program_id(0) * tm).astype(jnp.uint32) * jnp.uint32(lanes)

    def body(r, carry):
        r0 = pl.multiple_of(r * sub_rows, sub_rows)
        off = tile_base + (r0 * lanes).astype(jnp.uint32)

        # Globally unique counter per element, mixed with the seed, then lowbias32.
        v = (flat + off) ^ seed_u
        v = v ^ (v >> 16)
        v = v * jnp.uint32(0x7FEB352D)
        v = v ^ (v >> 15)
        v = v * jnp.uint32(0x846CA68B)
        v = v ^ (v >> 16)

        # Sum of the 4 bytes of the hash -> approx N(510, std^2) (Irwin-Hall n=4).
        s = (v & mask_b) + ((v >> 8) & mask_b)
        tot = (s & mask_lo) + (s >> 16)

        factor = tot.astype(jnp.float32) * a + b            # = 1 + coef * z
        x = x_ref[pl.ds(r0, sub_rows), :].astype(jnp.float32)
        o_ref[pl.ds(r0, sub_rows), :] = (x * factor).astype(o_ref.dtype)
        return carry

    unroll = 2 if (n_sub > 1 and n_sub % 2 == 0) else 1
    jax.lax.fori_loop(0, n_sub, body, 0, unroll=unroll)


def speckle_noise(images, seed=0, coef=COEF):
    """images: NCHW tensor. Returns images + images * N(0, coef), elementwise i.i.d."""
    orig_shape = images.shape
    dtype = images.dtype
    total = int(images.size)

    # Sub-block / padding granularity matching the dtype's sublane packing:
    # (8,128) f32, (16,128) bf16, (32,128) int8.
    sub_rows = max(8, 32 // jnp.dtype(dtype).itemsize)

    rows = _cdiv(total, _LANES)
    rows_p = _round_up(rows, sub_rows)
    padded_total = rows_p * _LANES

    flat = jnp.reshape(images, (-1,))                 # layout-trivial, no copy
    if padded_total != total:                         # only for ragged sizes
        flat = jnp.pad(flat, (0, padded_total - total))
    slab = jnp.reshape(flat, (rows_p, _LANES))

    # Biggest tile that fits comfortably in VMEM, but keep the grid >= 2 steps
    # whenever possible so both v7x TensorCores get work.
    half = _round_up(_cdiv(rows_p, 2), sub_rows)
    tile_rows = max(sub_rows, min(_TILE_ROWS, half))
    grid = (_cdiv(rows_p, tile_rows),)

    seed_arr = jnp.asarray([seed], dtype=jnp.int32)

    out_slab = pl.pallas_call(
        functools.partial(_speckle_kernel, coef=float(coef), sub_rows=sub_rows),
        out_shape=jax.ShapeDtypeStruct(slab.shape, slab.dtype),
        grid_spec=pltpu.PrefetchScalarGridSpec(
            num_scalar_prefetch=1,
            grid=grid,
            in_specs=[pl.BlockSpec((tile_rows, _LANES), lambda i, seed: (i, 0))],
            out_specs=pl.BlockSpec((tile_rows, _LANES), lambda i, seed: (i, 0)),
        ),
        compiler_params=pltpu.CompilerParams(
            dimension_semantics=("parallel",),
        ),
    )(seed_arr, slab)

    if padded_total != total:
        return jnp.reshape(out_slab.reshape(-1)[:total], orig_shape)
    return jnp.reshape(out_slab, orig_shape)


if __name__ == "__main__":
    key = jax.random.PRNGKey(0)
    # NCHW, small deterministic example consistent with the module's forward.
    x = jax.random.normal(key, (2, 4, 16, 16), dtype=jnp.float32)

    y = jax.block_until_ready(speckle_noise(x, seed=0))

    # Sanity checks: shape/dtype preserved, multiplicative noise of magnitude ~COEF,
    # approximately zero-mean.
    assert y.shape == x.shape and y.dtype == x.dtype
    rel = (y - x) / jnp.where(jnp.abs(x) > 1e-6, x, 1.0)
    rel_std = float(jnp.std(rel))
    rel_mean = float(jnp.mean(rel))
    assert 0.15 < rel_std < 0.7, f"unexpected noise scale: {rel_std}"
    assert abs(rel_mean) < 0.1, f"unexpected noise mean: {rel_mean}"

    print("KERNEL_OK")
</pallas_src>

<mosaic_0001>
module attributes {stable_mosaic.version = 11 : i64} {
  func.func @_speckle_kernel(%arg0: i32, %arg1: memref<1xi32, #tpu.memory_space<smem>>, %arg2: memref<8x512xf32, #tpu.memory_space<vmem>>, %arg3: memref<8x512xf32, #tpu.memory_space<vmem>>) attributes {dimension_semantics = [#tpu.dimension_semantics<parallel>], iteration_bounds = array<i64: 1>, scalar_prefetch = 1 : i64, scratch_operands = 0 : i64, tpu.core_type = #tpu.core_type<tc>, window_params = [{transform_indices = @transform_0, window_bounds = array<i64: 8, 512>}, {transform_indices = @transform_1, window_bounds = array<i64: 8, 512>}]} {
    %0 = tpu.iota {dimensions = array<i32: 0>} : vector<8x512xi32>
    %1 = tpu.iota {dimensions = array<i32: 1>} : vector<8x512xi32>
    %c512_i32 = arith.constant 512 : i32
    %2 = vector.broadcast %c512_i32 : i32 to vector<8x512xi32>
    %3 = arith.muli %0, %2 : vector<8x512xi32>
    %4 = arith.addi %3, %1 : vector<8x512xi32>
    %c0 = arith.constant 0 : index
    %5 = memref.load %arg1[%c0] : memref<1xi32, #tpu.memory_space<smem>>
    %c-1640531527_i32 = arith.constant -1640531527 : i32
    %6 = arith.muli %5, %c-1640531527_i32 : i32
    %c-2048144789_i32 = arith.constant -2048144789 : i32
    %7 = arith.addi %6, %c-2048144789_i32 : i32
    %c8_i32 = arith.constant 8 : i32
    %8 = arith.muli %arg0, %c8_i32 : i32
    %c512_i32_0 = arith.constant 512 : i32
    %9 = arith.muli %8, %c512_i32_0 : i32
    %c16711935_i32 = arith.constant 16711935 : i32
    %c65535_i32 = arith.constant 65535 : i32
    %cst = arith.constant 0.00236805622 : f32
    %cst_1 = arith.constant -0.207708701 : f32
    %c0_i32 = arith.constant 0 : i32
    %c8_i32_2 = arith.constant 8 : i32
    %10 = arith.muli %c0_i32, %c8_i32_2 : i32
    %11 = tpu.assume_multiple %10, 8 : i32
    %c512_i32_3 = arith.constant 512 : i32
    %12 = arith.muli %11, %c512_i32_3 : i32
    %13 = arith.addi %9, %12 : i32
    %14 = vector.broadcast %13 : i32 to vector<8x512xi32>
    %15 = arith.addi %4, %14 : vector<8x512xi32>
    %16 = vector.broadcast %7 : i32 to vector<8x512xi32>
    %17 = arith.xori %15, %16 : vector<8x512xi32>
    %c16_i32 = arith.constant 16 : i32
    %18 = vector.broadcast %c16_i32 : i32 to vector<8x512xi32>
    %19 = arith.shrui %17, %18 : vector<8x512xi32>
    %20 = arith.xori %17, %19 : vector<8x512xi32>
    %c2146121005_i32 = arith.constant 2146121005 : i32
    %21 = vector.broadcast %c2146121005_i32 : i32 to vector<8x512xi32>
    %22 = arith.muli %20, %21 : vector<8x512xi32>
    %c15_i32 = arith.constant 15 : i32
    %23 = vector.broadcast %c15_i32 : i32 to vector<8x512xi32>
    %24 = arith.shrui %22, %23 : vector<8x512xi32>
    %25 = arith.xori %22, %24 : vector<8x512xi32>
    %c-2073254261_i32 = arith.constant -2073254261 : i32
    %26 = vector.broadcast %c-2073254261_i32 : i32 to vector<8x512xi32>
    %27 = arith.muli %25, %26 : vector<8x512xi32>
    %c16_i32_4 = arith.constant 16 : i32
    %28 = vector.broadcast %c16_i32_4 : i32 to vector<8x512xi32>
    %29 = arith.shrui %27, %28 : vector<8x512xi32>
    %30 = arith.xori %27, %29 : vector<8x512xi32>
    %31 = vector.broadcast %c16711935_i32 : i32 to vector<8x512xi32>
    %32 = arith.andi %30, %31 : vector<8x512xi32>
    %c8_i32_5 = arith.constant 8 : i32
    %33 = vector.broadcast %c8_i32_5 : i32 to vector<8x512xi32>
    %34 = arith.shrui %30, %33 : vector<8x512xi32>
    %35 = vector.broadcast %c16711935_i32 : i32 to vector<8x512xi32>
    %36 = arith.andi %34, %35 : vector<8x512xi32>
    %37 = arith.addi %32, %36 : vector<8x512xi32>
    %38 = vector.broadcast %c65535_i32 : i32 to vector<8x512xi32>
    %39 = arith.andi %37, %38 : vector<8x512xi32>
    %c16_i32_6 = arith.constant 16 : i32
    %40 = vector.broadcast %c16_i32_6 : i32 to vector<8x512xi32>
    %41 = arith.shrui %37, %40 : vector<8x512xi32>
    %42 = arith.addi %39, %41 : vector<8x512xi32>
    %43 = arith.uitofp %42 : vector<8x512xi32> to vector<8x512xf32>
    %44 = vector.broadcast %cst : f32 to vector<8x512xf32>
    %45 = arith.mulf %43, %44 : vector<8x512xf32>
    %46 = vector.broadcast %cst_1 : f32 to vector<8x512xf32>
    %47 = arith.addf %45, %46 : vector<8x512xf32>
    %48 = arith.index_cast %11 : i32 to index
    %c0_7 = arith.constant 0 : index
    %49 = vector.load %arg2[%48, %c0_7] : memref<8x512xf32, #tpu.memory_space<vmem>>, vector<8x512xf32>
    %50 = arith.mulf %49, %47 : vector<8x512xf32>
    %51 = arith.index_cast %11 : i32 to index
    %c0_8 = arith.constant 0 : index
    %52 = vector.load %arg3[%51, %c0_8] : memref<8x512xf32, #tpu.memory_space<vmem>>, vector<8x512xf32>
    tpu.vector_store %arg3[%51, %c0_8], %50 {strides = array<i32>} : memref<8x512xf32, #tpu.memory_space<vmem>>, vector<8x512xf32>,
    %c1_i32 = arith.constant 1 : i32
    return
  }
  func.func @transform_0(%arg0: i32, %arg1: memref<1xi32, #tpu.memory_space<smem>>) -> (i32, i32) {
    %c0_i32 = arith.constant 0 : i32
    %c0_i32_0 = arith.constant 0 : i32
    return %arg0, %c0_i32 : i32, i32
  }
  func.func @transform_1(%arg0: i32, %arg1: memref<1xi32, #tpu.memory_space<smem>>) -> (i32, i32) {
    %c0_i32 = arith.constant 0 : i32
    %c0_i32_0 = arith.constant 0 : i32
    return %arg0, %c0_i32 : i32, i32
  }
}

</mosaic_0001>

<bundles_post_ra>
// kernel: tpu_custom_call.1
= control target key start
LH: loop header
LB: loop body
LE: loop exit
PB: predicated region body
PF: predicated region fallthrough
CT: control target
= control target key end

     0   :  { %8 = vsyncpa [#allocation5], 0  ;;  %s259_s0 = inlined_call_operand.<no memory space> [shape: s32[1], index: 0, kind: input, shape index: {}]   ;;  %s260_s1 = inlined_call_operand.hbm [shape: f32[8,512], index: 1, kind: input, shape index: {}]   ;;  %s261_s2 = inlined_call_operand.hbm [shape: f32[8,512], index: 2, kind: output, shape index: {}]  }
   0x1   :  { %9 = vsyncpa [#allocation6], 0  ;;  %s15_s11 = sshll.u32 %s260_s1, 4  ;;  %s233_s12 = smov [#allocation4]   ;;  %s16_s11 = int_to_ptr.hbm [resolvable:$true] %s15_s11 }
   0x2   :  { %s17_s13 = sshll.u32 %s233_s12, 4  ;;  %s18_s13 = int_to_ptr.vmem [resolvable:$true] %s17_s13 }
   0x3   :  { %20 = dma.hbm_to_vmem [thread:$0]  %s16_s11, 512, %s18_s13, [#allocation5]  }
   0x4   :  { %229 = dma.done.wait [#allocation5], 512  }
   0x5   :  { %230 = vsyncadd [#allocation5], 4294966784  ;;  %v25_v0 = vlaneseq  ;;  %s38_s16 = smul.u32 2654435769, %s259_s0  ;;  %s234_s0 = smov [#allocation7]  }
   0x6   :  { %s167_s1 = sshll.u32 %s234_s0, 4  ;;  %s169_s20 = sshll.u32 %s261_s2, 4  ;;  %s168_s1 = int_to_ptr.vmem [resolvable:$true] %s167_s1  ;;  %s170_s20 = int_to_ptr.hbm [resolvable:$true] %s169_s20 }
   0x7   :  { %v26_v1 = vshrl.u32 %v25_v0, 7  ;;  %v28_v2 = vand.u32 127, %v25_v0  ;;  %s39_s17 = sadd.s32 2246822507, %s38_s16 }
   0x8   :  { %v48_v7 = vstv %s39_s17 }
   0x9   :  { %v32_v3 = vmul.u32 512, %v26_v1  ;;  %v29_v4 = vadd.s32 128, %v28_v2  ;;  %v30_v5 = vadd.s32 256, %v28_v2  ;;  %v31_v6 = vadd.s32 384, %v28_v2 }
   0xb   :  { %v33_v8 = vadd.s32 %v32_v3, %v28_v2  ;;  %v34_v9 = vadd.s32 %v32_v3, %v29_v4  ;;  %v35_v10 = vadd.s32 %v32_v3, %v30_v5  ;;  %v36_v11 = vadd.s32 %v32_v3, %v31_v6 }
   0xd   :  { %v49_v12 = vxor.u32 %v48_v7, %v33_v8  ;;  %v50_v13 = vxor.u32 %v48_v7, %v34_v9  ;;  %v51_v14 = vxor.u32 %v48_v7, %v35_v10  ;;  %v52_v15 = vxor.u32 %v48_v7, %v36_v11 }
   0xf   :  { %v53_v16 = vshrl.u32 %v49_v12, 16  ;;  %v54_v17 = vshrl.u32 %v50_v13, 16  ;;  %v55_v18 = vshrl.u32 %v51_v14, 16  ;;  %v56_v19 = vshrl.u32 %v52_v15, 16 }
  0x11   :  { %v57_v20 = vxor.u32 %v53_v16, %v49_v12  ;;  %v58_v21 = vxor.u32 %v54_v17, %v50_v13  ;;  %v59_v22 = vxor.u32 %v55_v18, %v51_v14  ;;  %v60_v23 = vxor.u32 %v56_v19, %v52_v15 }
  0x13   :  { %v61_v24 = vmul.u32 2146121005, %v57_v20  ;;  %v62_v25 = vmul.u32 2146121005, %v58_v21  ;;  %v63_v26 = vmul.u32 2146121005, %v59_v22 }
  0x14   :  { %v64_v27 = vmul.u32 2146121005, %v60_v23 }
  0x15   :  { %v65_v28 = vshrl.u32 %v61_v24, 15  ;;  %v66_v29 = vshrl.u32 %v62_v25, 15  ;;  %v67_v30 = vshrl.u32 %v63_v26, 15 }
  0x16   :  { %v68_v31 = vshrl.u32 %v64_v27, 15 }
  0x17   :  { %v69_v32 = vxor.u32 %v65_v28, %v61_v24  ;;  %v70_v33 = vxor.u32 %v66_v29, %v62_v25  ;;  %v71_v34 = vxor.u32 %v67_v30, %v63_v26 }
  0x18   :  { %v72_v35 = vxor.u32 %v68_v31, %v64_v27 }
  0x19   :  { %v73_v36 = vmul.u32 2221713035, %v69_v32  ;;  %v74_v37 = vmul.u32 2221713035, %v70_v33  ;;  %v75_v38 = vmul.u32 2221713035, %v71_v34 }
  0x1a   :  { %v76_v39 = vmul.u32 2221713035, %v72_v35 }
  0x1b   :  { %v77_v40 = vshrl.u32 %v73_v36, 16  ;;  %v78_v41 = vshrl.u32 %v74_v37, 16  ;;  %v79_v42 = vshrl.u32 %v75_v38, 16 }
  0x1c   :  { %v80_v43 = vshrl.u32 %v76_v39, 16 }
  0x1d   :  { %v81_v44 = vxor.u32 %v77_v40, %v73_v36  ;;  %v82_v45 = vxor.u32 %v78_v41, %v74_v37  ;;  %v83_v46 = vxor.u32 %v79_v42, %v75_v38  ;;  %v148_v38 = vld [vmem:[#allocation4] sm:$0xff] }
  0x1e   :  { %v84_v47 = vxor.u32 %v80_v43, %v76_v39  ;;  %v149_v39 = vld [vmem:[#allocation4 + $0x8] sm:$0xff] }
  0x1f   :  { %v85_v48 = vand.u32 16711935, %v81_v44  ;;  %v89_v49 = vshrl.u32 %v81_v44, 8  ;;  %v86_v50 = vand.u32 16711935, %v82_v45  ;;  %v90_v51 = vshrl.u32 %v82_v45, 8 }
  0x20   :  { %v87_v52 = vand.u32 16711935, %v83_v46  ;;  %v91_v53 = vshrl.u32 %v83_v46, 8  ;;  %v88_v54 = vand.u32 16711935, %v84_v47  ;;  %v92_v55 = vshrl.u32 %v84_v47, 8 }
  0x21   :  { %v93_v56 = vand.u32 16711935, %v89_v49  ;;  %v94_v57 = vand.u32 16711935, %v90_v51  ;;  %v150_v44 = vld [vmem:[#allocation4 + $0x10] sm:$0xff]  ;;  %v151_v45 = vld [vmem:[#allocation4 + $0x18] sm:$0xff] }
  0x22   :  { %v95_v58 = vand.u32 16711935, %v91_v53  ;;  %v96_v59 = vand.u32 16711935, %v92_v55 }
  0x23   :  { %v97_v60 = vadd.s32 %v93_v56, %v85_v48  ;;  %v98_v61 = vadd.s32 %v94_v57, %v86_v50 }
  0x24   :  { %v99_v62 = vadd.s32 %v95_v58, %v87_v52  ;;  %v100_v63 = vadd.s32 %v96_v59, %v88_v54 }
  0x25   :  { %v101_v0 = vand.u32 65535, %v97_v60  ;;  %v105_v1 = vshrl.u32 %v97_v60, 16  ;;  %v102_v2 = vand.u32 65535, %v98_v61  ;;  %v106_v3 = vshrl.u32 %v98_v61, 16 }
  0x26   :  { %v103_v4 = vand.u32 65535, %v99_v62  ;;  %v107_v5 = vshrl.u32 %v99_v62, 16  ;;  %v104_v6 = vand.u32 65535, %v100_v63  ;;  %v108_v7 = vshrl.u32 %v100_v63, 16 }
  0x27   :  { %v109_v8 = vadd.s32 %v105_v1, %v101_v0  ;;  %v110_v9 = vadd.s32 %v106_v3, %v102_v2 }
  0x28   :  { %v111_v10 = vadd.s32 %v107_v5, %v103_v4  ;;  %v112_v11 = vadd.s32 %v108_v7, %v104_v6 }
  0x29   :  { %v113_v12 = vshrl.u32 %v109_v8, 16  ;;  %v114_v13 = vand.u32 65535, %v109_v8  ;;  %v119_v14 = vshrl.u32 %v110_v9, 16  ;;  %v120_v15 = vand.u32 65535, %v110_v9 }
  0x2a   :  { %v125_v16 = vshrl.u32 %v111_v10, 16  ;;  %v126_v17 = vand.u32 65535, %v111_v10  ;;  %v131_v18 = vshrl.u32 %v112_v11, 16  ;;  %v132_v19 = vand.u32 65535, %v112_v11 }
  0x2b   :  { %v115_v20 = vcvt.s32.f32 %v113_v12  ;;  %v117_v21 = vcvt.s32.f32 %v114_v13  ;;  %v121_v22 = vcvt.s32.f32 %v119_v14  ;;  %v123_v23 = vcvt.s32.f32 %v120_v15 }
  0x2c   :  { %v127_v24 = vcvt.s32.f32 %v125_v16  ;;  %v129_v25 = vcvt.s32.f32 %v126_v17  ;;  %v133_v26 = vcvt.s32.f32 %v131_v18  ;;  %v135_v27 = vcvt.s32.f32 %v132_v19 }
  0x2d   :  { %v116_v28 = vmul.f32 65536.0, %v115_v20  ;;  %v122_v29 = vmul.f32 65536.0, %v121_v22 }
  0x2e   :  { %v128_v30 = vmul.f32 65536.0, %v127_v24  ;;  %v134_v31 = vmul.f32 65536.0, %v133_v26 }
  0x2f   :  { %v118_v32 = vadd.f32 %v117_v21, %v116_v28  ;;  %v124_v33 = vadd.f32 %v123_v23, %v122_v29 }
  0x30   :  { %v130_v34 = vadd.f32 %v129_v25, %v128_v30  ;;  %v136_v35 = vadd.f32 %v135_v27, %v134_v31 }
  0x31   :  { %v137_v36 = vmul.f32 0.0023680562, %v118_v32  ;;  %v138_v37 = vmul.f32 0.0023680562, %v124_v33 }
  0x32   :  { %v139_v40 = vmul.f32 0.0023680562, %v130_v34  ;;  %v140_v41 = vmul.f32 0.0023680562, %v136_v35 }
  0x33   :  { %v141_v42 = vadd.f32 -0.2077087, %v137_v36  ;;  %v142_v43 = vadd.f32 -0.2077087, %v138_v37 }
  0x34   :  { %v143_v46 = vadd.f32 -0.2077087, %v139_v40  ;;  %v144_v47 = vadd.f32 -0.2077087, %v140_v41 }
  0x35   :  { %v152_v48 = vmul.f32 %v148_v38, %v141_v42  ;;  %v153_v49 = vmul.f32 %v149_v39, %v142_v43 }
  0x36   :  { %v154_v50 = vmul.f32 %v150_v44, %v143_v46  ;;  %v155_v51 = vmul.f32 %v151_v45, %v144_v47 }
  0x37   :  { %158 = vst [vmem:[#allocation7] sm:$0xff] %v152_v48 }
  0x38   :  { %159 = vst [vmem:[#allocation7 + $0x8] sm:$0xff] %v153_v49 }
  0x39   :  { %160 = vst [vmem:[#allocation7 + $0x10] sm:$0xff] %v154_v50 }
  0x3a   :  { %161 = vst [vmem:[#allocation7 + $0x18] sm:$0xff] %v155_v51 }
  0x3b   :  { %172 = dma.vmem_to_hbm [thread:$0]  %s168_s1, 512, %s170_s20, [#allocation6]  }
  0x3c   :  { %231 = dma.done.wait [#allocation6], 512  }
  0x3d   :  { %232 = vsyncadd [#allocation6], 4294966784 }
  0x3e   :  { %177 = vsyncpa [#allocation5], 1 }
  0x3f   :  { %178 = vsyncpa [#allocation6], 1 }

</bundles_post_ra>
